<compile_context>
chip_gen: v7x
topology: tpu7x:2x2x1
jax: 0.10.0
libtpu: 0.0.40
codegen_flags: <defaults>
</compile_context>

<pallas_src>
import functools

import jax
import jax.numpy as jnp
from jax.experimental import pallas as pl
from jax.experimental.pallas import tpu as pltpu


def mice_impute_kernel(x_ref, w_ref, b_ref, m_ref, out_ref, *, bf16_matmul):
    # x_ref : (TN, L)  packed row tile; the L=128 lanes hold g rows x D_pad feats.
    # w_ref : (L, L)   block-diagonal kron(I_g, W_pad).
    # b_ref : (1, L)   bias per output feature, tiled g times.
    # m_ref : (1, L)   per-feature means for the initial fill, tiled g times.
    x = x_ref[...]
    nan_mask = jnp.isnan(x)
    x_fill = jnp.where(nan_mask, m_ref[...], x)              # initial mean fill
    if bf16_matmul:
        # Compute-bound regime (large D): bf16 MXU passes, f32 accumulate.
        pred = jnp.dot(x_fill.astype(jnp.bfloat16),
                       w_ref[...].astype(jnp.bfloat16),
                       preferred_element_type=jnp.float32)
    else:
        pred = jnp.dot(x_fill, w_ref[...],
                       preferred_element_type=jnp.float32)
    pred = pred + b_ref[...]
    # x_fill == x wherever nan_mask is False -> reuse it (one fewer live stream).
    out_ref[...] = jnp.where(nan_mask, pred, x_fill).astype(out_ref.dtype)


_DIVISORS_128 = (1, 2, 4, 8, 16, 32, 64, 128)


def _cdiv(a, b):
    return -(-a // b)


def _round_up(a, m):
    return _cdiv(a, m) * m


def _plan_row_tile(n2, lanes, w_resident_bytes):
    """Packed-row tile: multiple of 8 sublanes, ~2 MiB of input per grid step,
    shrunk only if the VMEM estimate would not fit comfortably on v7x."""
    row_bytes = lanes * 4
    # ~2 MiB in per step => ~4 MiB of DMA per step, a few microseconds of HBM
    # time vs the ~0.35 us fixed grid-step overhead.
    tn = max(8, ((2 << 20) // row_bytes) // 8 * 8)
    tn = min(tn, _round_up(n2, 8))
    # VMEM estimate: double-buffered in + out (4 tiles) plus ~3 materialized
    # intermediates (nan_mask / x_fill / pred) plus the resident W'.
    budget = (36 << 20) - w_resident_bytes
    while tn > 8 and 7 * tn * row_bytes > budget:
        tn = max(8, ((tn // 2) // 8) * 8)
    # Prefer >= 4 grid steps (>= 2 per v7x TensorCore) when data is plentiful,
    # but never drop tiles below ~0.5 MiB; tiny inputs stay a single tile.
    while tn > 8 and tn * row_bytes > (1 << 19) and _cdiv(n2, tn) < 4:
        tn = max(8, ((tn // 2) // 8) * 8)
    return tn


@jax.jit
def gnet_mi_forward(x, w, b, means):
    """Pallas implementation of GNet_MI.forward (iterative-imputer transform)."""
    n, d = x.shape
    x = x.astype(jnp.float32)
    w = w.astype(jnp.float32)
    b = jnp.reshape(b, (-1,)).astype(jnp.float32)
    means = jnp.reshape(means, (-1,)).astype(jnp.float32)

    # ---- Lane packing: g original rows share the 128-wide lane axis. --------
    if d <= 128:
        d_pad = next(dv for dv in _DIVISORS_128 if dv >= d)
        lanes = 128
    else:
        d_pad = _round_up(d, 128)
        lanes = d_pad
    g = lanes // d_pad

    if d_pad != d:
        # Padded feature columns are zeros (never NaN); the matching rows of
        # W_pad are zero, so they contribute nothing and are sliced off below.
        x = jnp.pad(x, ((0, 0), (0, d_pad - d)))
        w = jnp.pad(w, ((0, d_pad - d), (0, d_pad - d)))
        b = jnp.pad(b, (0, d_pad - d))
        means = jnp.pad(means, (0, d_pad - d))

    if g > 1:
        # Block-diagonal weights: packed_row @ kron(I_g, W) applies W to each
        # of the g original rows packed into the 128 lanes.
        w = jnp.kron(jnp.eye(g, dtype=jnp.float32), w)       # (128, 128)
        b = jnp.tile(b, g)
        means = jnp.tile(means, g)
    bt = jnp.reshape(b, (1, lanes))
    mt = jnp.reshape(means, (1, lanes))

    # ---- Row packing + tiling. -----------------------------------------------
    n2 = _cdiv(n, g)                               # packed rows
    w_bytes = lanes * lanes * 4
    big_w = w_bytes >= (1 << 20)                   # single-buffer W' when large
    w_copies = 1 if big_w else 2
    tn = _plan_row_tile(n2, lanes, w_copies * w_bytes)
    n2_pad = _round_up(n2, tn)                     # tile need not divide N
    n_row_pad = n2_pad * g

    padded = (n_row_pad != n) or (d_pad != d)
    if n_row_pad != n:
        # Padded rows are zeros (not NaN) -> pass through, sliced off below.
        x = jnp.pad(x, ((0, n_row_pad - n), (0, 0)))
    xp = jnp.reshape(x, (n2_pad, lanes))           # free row-major reshape

    grid = (n2_pad // tn,)
    bf16_matmul = d >= 256                         # mem-bound at small D

    if big_w:
        w_spec = pl.BlockSpec((lanes, lanes), lambda i: (0, 0),
                              pipeline_mode=pl.Buffered(1))
    else:
        w_spec = pl.BlockSpec((lanes, lanes), lambda i: (0, 0))
    vec_spec = pl.BlockSpec((1, lanes), lambda i: (0, 0))

    # VMEM: double-buffered in/out tiles + ~3 materialized intermediates
    # + resident W' + small vectors.  Planner keeps this under ~36 MiB, so the
    # 48 MiB cap leaves headroom even on v7x (64 MiB physical per TC).
    vmem_need = 7 * tn * lanes * 4 + w_copies * w_bytes + 4 * 2 * lanes * 4
    vmem_limit = int(min(max(vmem_need + vmem_need // 4, 16 << 20), 48 << 20))

    # Alias only when padding created a fresh temp; aliasing a non-donated
    # entry parameter would make XLA insert a full copy (extra HBM traffic).
    io_alias = {0: 0} if padded else {}

    out_p = pl.pallas_call(
        functools.partial(mice_impute_kernel, bf16_matmul=bf16_matmul),
        out_shape=jax.ShapeDtypeStruct((n2_pad, lanes), jnp.float32),
        grid_spec=pltpu.PrefetchScalarGridSpec(
            num_scalar_prefetch=0,
            grid=grid,
            in_specs=[
                pl.BlockSpec((tn, lanes), lambda i: (i, 0)),  # packed x tile
                w_spec,                                       # kron(I_g, W)
                vec_spec,                                     # bias (tiled)
                vec_spec,                                     # means (tiled)
            ],
            out_specs=pl.BlockSpec((tn, lanes), lambda i: (i, 0)),
        ),
        compiler_params=pltpu.CompilerParams(
            dimension_semantics=("parallel",),
            vmem_limit_bytes=vmem_limit),
        input_output_aliases=io_alias,
    )(xp, w, bt, mt)

    out = jnp.reshape(out_p, (n_row_pad, d_pad))   # free reshape back
    return out[:n, :d]


def reference_forward(x, w, b, means):
    nan_mask = jnp.isnan(x)
    x_filled = jnp.where(nan_mask, means, x)
    pred = x_filled @ w + b
    return jnp.where(nan_mask, pred, x).astype(jnp.float32)


if __name__ == "__main__":
    N, D = 512, 8          # tabular / DataFrame-like: 512 rows, 8 features
    key = jax.random.PRNGKey(0)
    kx, kmask, kw, kb, km = jax.random.split(key, 5)

    # Input with a deterministic missing-entry (NaN) pattern.
    x = jax.random.normal(kx, (N, D), dtype=jnp.float32)
    missing = jax.random.bernoulli(kmask, p=0.25, shape=(N, D))
    x = jnp.where(missing, jnp.nan, x)

    # Deterministic synthetic "fitted" imputer parameters.
    w = 0.1 * jax.random.normal(kw, (D, D), dtype=jnp.float32)
    w = w * (1.0 - jnp.eye(D, dtype=jnp.float32))      # no self-regression
    b = 0.05 * jax.random.normal(kb, (1, D), dtype=jnp.float32)
    means = 0.2 * jax.random.normal(km, (1, D), dtype=jnp.float32)

    out = gnet_mi_forward(x, w, b, means)
    out = jax.block_until_ready(out)

    ref = reference_forward(x, w, b, means)
    assert out.shape == (N, D) and out.dtype == jnp.float32
    assert not bool(jnp.isnan(out).any())
    assert bool(jnp.allclose(out, ref, atol=1e-5, rtol=1e-5))

    print("KERNEL_OK")
</pallas_src>

<mosaic_0001>
module attributes {stable_mosaic.version = 11 : i64} {
  func.func @mice_impute_kernel(%arg0: i32, %arg1: memref<32x128xf32, #tpu.memory_space<vmem>>, %arg2: memref<128x128xf32, #tpu.memory_space<vmem>>, %arg3: memref<1x128xf32, #tpu.memory_space<vmem>>, %arg4: memref<1x128xf32, #tpu.memory_space<vmem>>, %arg5: memref<32x128xf32, #tpu.memory_space<vmem>>) attributes {dimension_semantics = [#tpu.dimension_semantics<parallel>], iteration_bounds = array<i64: 1>, scalar_prefetch = 0 : i64, scratch_operands = 0 : i64, tpu.core_type = #tpu.core_type<tc>, window_params = [{transform_indices = @transform_0, window_bounds = array<i64: 32, 128>}, {pipeline_mode = #tpu.pipeline_mode<synchronous>, transform_indices = @transform_1, window_bounds = array<i64: 128, 128>}, {pipeline_mode = #tpu.pipeline_mode<synchronous>, transform_indices = @transform_2, window_bounds = array<i64: 1, 128>}, {pipeline_mode = #tpu.pipeline_mode<synchronous>, transform_indices = @transform_3, window_bounds = array<i64: 1, 128>}, {transform_indices = @transform_4, window_bounds = array<i64: 32, 128>}]} {
    %c0 = arith.constant 0 : index
    %c0_0 = arith.constant 0 : index
    %0 = vector.load %arg1[%c0, %c0_0] : memref<32x128xf32, #tpu.memory_space<vmem>>, vector<32x128xf32>
    %1 = arith.cmpf one, %0, %0 : vector<32x128xf32>
    %c0_1 = arith.constant 0 : index
    %c0_2 = arith.constant 0 : index
    %2 = vector.load %arg4[%c0_1, %c0_2] : memref<1x128xf32, #tpu.memory_space<vmem>>, vector<1x128xf32>
    %3 = vector.shape_cast %2 : vector<1x128xf32> to vector<1x128xf32>
    %4 = vector.broadcast %3 : vector<1x128xf32> to vector<32x128xf32>
    %5 = arith.select %1, %4, %0 : vector<32x128xi1>, vector<32x128xf32>
    %c0_3 = arith.constant 0 : index
    %c0_4 = arith.constant 0 : index
    %6 = vector.load %arg2[%c0_3, %c0_4] : memref<128x128xf32, #tpu.memory_space<vmem>>, vector<128x128xf32>
    %cst = arith.constant dense<0.000000e+00> : vector<32x128xf32>
    %7 = tpu.matmul %5, %6, %cst {dimension_numbers = #tpu.dot_dimension_numbers<[1], [0], [0], [1], [0, 0, 1, 1], [], []>} : vector<32x128xf32>, vector<128x128xf32>, vector<32x128xf32> -> vector<32x128xf32>
    %c0_5 = arith.constant 0 : index
    %c0_6 = arith.constant 0 : index
    %8 = vector.load %arg3[%c0_5, %c0_6] : memref<1x128xf32, #tpu.memory_space<vmem>>, vector<1x128xf32>
    %9 = vector.broadcast %8 : vector<1x128xf32> to vector<32x128xf32>
    %10 = arith.addf %7, %9 : vector<32x128xf32>
    %11 = arith.select %1, %10, %5 : vector<32x128xi1>, vector<32x128xf32>
    %c0_7 = arith.constant 0 : index
    %c0_8 = arith.constant 0 : index
    %12 = vector.load %arg5[%c0_7, %c0_8] : memref<32x128xf32, #tpu.memory_space<vmem>>, vector<32x128xf32>
    tpu.vector_store %arg5[%c0_7, %c0_8], %11 {strides = array<i32>} : memref<32x128xf32, #tpu.memory_space<vmem>>, vector<32x128xf32>,
    return
  }
  func.func @transform_0(%arg0: i32) -> (i32, i32) {
    %c0_i32 = arith.constant 0 : i32
    %c0_i32_0 = arith.constant 0 : i32
    return %arg0, %c0_i32 : i32, i32
  }
  func.func @transform_1(%arg0: i32) -> (i32, i32) {
    %c0_i32 = arith.constant 0 : i32
    %c0_i32_0 = arith.constant 0 : i32
    %c0_i32_1 = arith.constant 0 : i32
    return %c0_i32, %c0_i32_0 : i32, i32
  }
  func.func @transform_2(%arg0: i32) -> (i32, i32) {
    %c0_i32 = arith.constant 0 : i32
    %c0_i32_0 = arith.constant 0 : i32
    %c0_i32_1 = arith.constant 0 : i32
    return %c0_i32, %c0_i32_0 : i32, i32
  }
  func.func @transform_3(%arg0: i32) -> (i32, i32) {
    %c0_i32 = arith.constant 0 : i32
    %c0_i32_0 = arith.constant 0 : i32
    %c0_i32_1 = arith.constant 0 : i32
    return %c0_i32, %c0_i32_0 : i32, i32
  }
  func.func @transform_4(%arg0: i32) -> (i32, i32) {
    %c0_i32 = arith.constant 0 : i32
    %c0_i32_0 = arith.constant 0 : i32
    return %arg0, %c0_i32 : i32, i32
  }
}

</mosaic_0001>

<bundles_post_ra>
// kernel: tile.10
= control target key start
LH: loop header
LB: loop body
LE: loop exit
PB: predicated region body
PF: predicated region fallthrough
CT: control target
= control target key end

     0   :  { %s28_s0 = inlined_call_operand.vmem [shape: f32[8], index: 0, kind: input, shape index: {}]   ;;  %s29_s1 = inlined_call_operand.vmem [shape: f32[16,8], index: 1, kind: output, shape index: {}]  }
   0x1   :  { %v4_v0 = vld [vmem:[%s28_s0] ss:$0 sm:$0xff] }
   0x2   :  { %5 = vst [vmem:[%s29_s1] sm:$0xff] %v4_v0  ;;  %8 = vst [vmem:[%s29_s1 + $0x8] sm:$0xff] %v4_v0 }

// kernel: tile.14
= control target key start
LH: loop header
LB: loop body
LE: loop exit
PB: predicated region body
PF: predicated region fallthrough
CT: control target
= control target key end

     0   :  { %s131_s10 = smov 120   ;;  %s132_s11 = smov 104   ;;  %vm3_vm0 = vcmask 64512   ;;  %vm9_vm1 = vcmask 1048512   ;;  %vm15_vm2 = vcmask 982912   ;;  %vm21_vm3 = vcmask 917312   ;;  %s207_s0 = inlined_call_operand.vmem [shape: f32[16,8], index: 0, kind: input, shape index: {}]   ;;  %s208_s1 = inlined_call_operand.vmem [shape: f32[1,128], index: 1, kind: output, shape index: {}]  }
   0x1   :  { %v101_v0 = vld [vmem:[%s207_s0 + $0xf] sm:$0x1]   ;;  %v103_v1 = vld [vmem:[%s207_s0 + $0xd] sm:$0x1]   ;;  %v102_v2 = vld [vmem:[%s207_s0 + $0xe] sm:$0x1]  }
   0x2   :  { %7 = vrot.lane.b32.xlu0 %v101_v0, %s131_s10  ;;  %19 = vrot.lane.b32.xlu1 %v103_v1, %s132_s11  ;;  %v104_v3 = vld [vmem:[%s207_s0 + $0xc] sm:$0x1]   ;;  %s133_s16 = smov 112   ;;  %s134_s17 = smov 96   ;;  %v105_v4 = vld [vmem:[%s207_s0 + $0xb] sm:$0x1]  }
   0x3   :  { %v106_v5 = vld [vmem:[%s207_s0 + $0xa] sm:$0x1]   ;;  %v2_v6 = vld [vmem:[%s207_s0] sm:$0x1]   ;;  %s135_s24 = smov 88   ;;  %s136_s25 = smov 80  }
   0x4   :  { %4 = vst.msk [vmem:[#allocation0] sm:$0x1] %vm3_vm0, %v2_v6   ;;  %v107_v7 = vld [vmem:[%s207_s0 + $0x9] sm:$0x1]   ;;  %v108_v8 = vld [vmem:[%s207_s0 + $0x8] sm:$0x1]  }
   0x5   :  { %s137_s30 = smov 72   ;;  %s138_s2 = smov 64   ;;  %v109_v9 = vld [vmem:[%s207_s0 + $0x7] sm:$0x1]   ;;  %v110_v10 = vld [vmem:[%s207_s0 + $0x6] sm:$0x1]  }
   0x6   :  { %13 = vrot.lane.b32.xlu0 %v102_v2, %s133_s16  ;;  %25 = vrot.lane.b32.xlu1 %v104_v3, %s134_s17  ;;  %s139_s7 = smov 56   ;;  %s140_s8 = smov 48   ;;  %v111_v11 = vld [vmem:[%s207_s0 + $0x5] sm:$0x1]   ;;  %v112_v12 = vld [vmem:[%s207_s0 + $0x4] sm:$0x1]  }
   0x7   :  { %s141_s13 = smov 40   ;;  %s142_s14 = smov 32   ;;  %v113_v13 = vld [vmem:[%s207_s0 + $0x3] sm:$0x1]   ;;  %v114_v14 = vld [vmem:[%s207_s0 + $0x2] sm:$0x1]  }
   0x8   :  { %s143_s19 = smov 24   ;;  %s144_s20 = smov 16   ;;  %v115_v15 = vld [vmem:[%s207_s0 + $0x1] sm:$0x1]   ;;  %vm27_vm4 = vcmask 851712   ;;  %vm33_vm5 = vcmask 786112  }
   0x9   :  { %s145_s0 = smov 8   ;;  %vm39_vm6 = vcmask 720512   ;;  %vm45_vm7 = vcmask 654912   ;;  %vm51_vm8 = vcmask 589312   ;;  %vm57_vm9 = vcmask 523712  }
   0xa   :  { %31 = vrot.lane.b32.xlu0 %v105_v4, %s135_s24  ;;  %37 = vrot.lane.b32.xlu1 %v106_v5, %s136_s25  ;;  %vm63_vm10 = vcmask 458112   ;;  %vm69_vm11 = vcmask 392512   ;;  %vm75_vm12 = vcmask 326912   ;;  %vm81_vm13 = vcmask 261312  }
   0xb   :  { %vm87_vm14 = vcmask 195712   ;;  %vm93_vm15 = vcmask 130112  }
   0xe   :  { %43 = vrot.lane.b32.xlu0 %v107_v7, %s137_s30  ;;  %49 = vrot.lane.b32.xlu1 %v108_v8, %s138_s2 }
  0x12   :  { %55 = vrot.lane.b32.xlu0 %v109_v9, %s139_s7  ;;  %61 = vrot.lane.b32.xlu1 %v110_v10, %s140_s8 }
  0x16   :  { %67 = vrot.lane.b32.xlu0 %v111_v11, %s141_s13  ;;  %73 = vrot.lane.b32.xlu1 %v112_v12, %s142_s14 }
  0x1a   :  { %79 = vrot.lane.b32.xlu0 %v113_v13, %s143_s19  ;;  %85 = vrot.lane.b32.xlu1 %v114_v14, %s144_s20 }
  0x1e   :  { %91 = vrot.lane.b32.xlu0 %v115_v15, %s145_s0 }
  0x74   :  { %v8_v16 = vpop.permute.xlu0 %7   ;;  %v20_v17 = vpop.permute.xlu1 %19  }
  0x75   :  { %10 = vst.msk [vmem:[#allocation0] sm:$0x1] %vm9_vm1, %v8_v16  }
  0x78   :  { %v14_v18 = vpop.permute.xlu0 %13   ;;  %v26_v19 = vpop.permute.xlu1 %25  }
  0x79   :  { %16 = vst.msk [vmem:[#allocation0] sm:$0x1] %vm15_vm2, %v14_v18  }
  0x7a   :  { %22 = vst.msk [vmem:[#allocation0] sm:$0x1] %vm21_vm3, %v20_v17  }
  0x7b   :  { %28 = vst.msk [vmem:[#allocation0] sm:$0x1] %vm27_vm4, %v26_v19  }
  0x7c   :  { %v32_v20 = vpop.permute.xlu0 %31   ;;  %v38_v21 = vpop.permute.xlu1 %37  }
  0x7d   :  { %34 = vst.msk [vmem:[#allocation0] sm:$0x1] %vm33_vm5, %v32_v20  }
  0x7e   :  { %40 = vst.msk [vmem:[#allocation0] sm:$0x1] %vm39_vm6, %v38_v21  }
  0x80   :  { %v44_v22 = vpop.permute.xlu0 %43   ;;  %v50_v23 = vpop.permute.xlu1 %49  }
  0x81   :  { %46 = vst.msk [vmem:[#allocation0] sm:$0x1] %vm45_vm7, %v44_v22  }
  0x82   :  { %52 = vst.msk [vmem:[#allocation0] sm:$0x1] %vm51_vm8, %v50_v23  }
  0x84   :  { %v56_v24 = vpop.permute.xlu0 %55   ;;  %v62_v25 = vpop.permute.xlu1 %61  }
  0x85   :  { %58 = vst.msk [vmem:[#allocation0] sm:$0x1] %vm57_vm9, %v56_v24  }
  0x86   :  { %64 = vst.msk [vmem:[#allocation0] sm:$0x1] %vm63_vm10, %v62_v25  }
  0x88   :  { %v68_v26 = vpop.permute.xlu0 %67   ;;  %v74_v27 = vpop.permute.xlu1 %73  }
  0x89   :  { %70 = vst.msk [vmem:[#allocation0] sm:$0x1] %vm69_vm11, %v68_v26  }
  0x8a   :  { %76 = vst.msk [vmem:[#allocation0] sm:$0x1] %vm75_vm12, %v74_v27  }
  0x8c   :  { %v80_v28 = vpop.permute.xlu0 %79   ;;  %v86_v29 = vpop.permute.xlu1 %85  }
  0x8d   :  { %82 = vst.msk [vmem:[#allocation0] sm:$0x1] %vm81_vm13, %v80_v28  }
  0x8e   :  { %88 = vst.msk [vmem:[#allocation0] sm:$0x1] %vm87_vm14, %v86_v29  }
  0x90   :  { %v92_v30 = vpop.permute.xlu0 %91  }
  0x91   :  { %94 = vst.msk [vmem:[#allocation0] sm:$0x1] %vm93_vm15, %v92_v30  }
  0x98   :  { %v98_v31 = vld [vmem:[#allocation0] sm:$0x1] }
  0x99   :  { %100 = vst [vmem:[%s208_s1] sm:$0x1] %v98_v31 }

// kernel: gnet_mi_forward.1
= control target key start
LH: loop header
LB: loop body
LE: loop exit
PB: predicated region body
PF: predicated region fallthrough
CT: control target
= control target key end

     0   :  { %s395_s1 = inlined_call_operand.vmem [shape: f32[128,128], index: 1, kind: input, shape index: {}]   ;;  %s396_s0 = inlined_call_operand.vmem [shape: f32[32,128], index: 0, kind: input, shape index: {}]   ;;  %s397_s3 = inlined_call_operand.vmem [shape: f32[1,128], index: 3, kind: input, shape index: {}]   ;;  %s398_s2 = inlined_call_operand.vmem [shape: f32[1,128], index: 2, kind: input, shape index: {}]   ;;  %s399_s4 = inlined_call_operand.vmem [shape: f32[32,128], index: 4, kind: output, shape index: {}]  }
   0x1   :  { %v36_v0 = vld [vmem:[%s395_s1] sm:$0xff]  ;;  %v37_v1 = vld [vmem:[%s395_s1 + $0x8] sm:$0xff]  ;;  %v38_v2 = vld [vmem:[%s395_s1 + $0x10] sm:$0xff] }
   0x2   :  { %v216_v3 = vpack.c.bf16 %v37_v1, %v36_v0  ;;  %v39_v4 = vld [vmem:[%s395_s1 + $0x18] sm:$0xff]  ;;  %v40_v6 = vld [vmem:[%s395_s1 + $0x20] sm:$0xff]  ;;  %v41_v7 = vld [vmem:[%s395_s1 + $0x28] sm:$0xff] }
   0x3   :  { %v220_v5 = vpack.c.bf16 %v39_v4, %v38_v2  ;;  %v224_v8 = vpack.c.bf16 %v41_v7, %v40_v6  ;;  %v310_v9 = vld [vmem:[%s396_s0] sm:$0xff]  ;;  %v42_v11 = vld [vmem:[%s395_s1 + $0x30] sm:$0xff]  ;;  %v43_v12 = vld [vmem:[%s395_s1 + $0x38] sm:$0xff] }
   0x4   :  { %217 = vmatprep.subr.bf16.mxu0 %v216_v3  ;;  %248 = vmatprep.subr.bf16.mxu1 %v216_v3  ;;  %v156_v10 = vld [vmem:[%s397_s3] ss:$0 sm:$0xff]  ;;  %vm21_vm0 = vcmp.ne.f32.partialorder %v310_v9, %v310_v9  ;;  %v326_v13 = vld [vmem:[%s396_s0 + $0x10] sm:$0xff]  ;;  %v228_v16 = vpack.c.bf16 %v43_v12, %v42_v11  ;;  %v45_v18 = vld [vmem:[%s395_s1 + $0x48] sm:$0xff] }
   0x5   :  { %219 = vmatpush3.bf16.msra.mxu0 %v216_v3  ;;  %256 = vmatpush3.bf16.msra.mxu1 %v216_v3  ;;  %v32_v14 = vsel %vm21_vm0, %v156_v10, %v310_v9  ;;  %vm23_vm1 = vcmp.ne.f32.partialorder %v326_v13, %v326_v13  ;;  %v44_v17 = vld [vmem:[%s395_s1 + $0x40] sm:$0xff]  ;;  %v46_v20 = vld [vmem:[%s395_s1 + $0x50] sm:$0xff]  ;;  %v47_v21 = vld [vmem:[%s395_s1 + $0x58] sm:$0xff] }
   0x6   :  { %221 = vmatprep.subr.bf16.mxu0 %v220_v5  ;;  %249 = vmatprep.subr.bf16.mxu1 %v220_v5  ;;  %v34_v15 = vsel %vm23_vm1, %v156_v10, %v326_v13  ;;  %v232_v19 = vpack.c.bf16 %v45_v18, %v44_v17  ;;  %v236_v22 = vpack.c.bf16 %v47_v21, %v46_v20  ;;  %v48_v23 = vld [vmem:[%s395_s1 + $0x60] sm:$0xff]  ;;  %v49_v24 = vld [vmem:[%s395_s1 + $0x68] sm:$0xff]  ;;  %v50_v26 = vld [vmem:[%s395_s1 + $0x70] sm:$0xff] }
   0x7   :  { %210 = vmatprep.mubr.f32.mxu0 %v32_v14  ;;  %213 = vmatprep.mubr.f32.mxu1 %v34_v15  ;;  %v240_v25 = vpack.c.bf16 %v49_v24, %v48_v23  ;;  %v51_v27 = vld [vmem:[%s395_s1 + $0x78] sm:$0xff]  ;;  %v18_v29 = vld [vmem:[%s396_s0 + $0x8] sm:$0xff]  ;;  %v157_v33 = vld [vmem:[%s398_s2] ss:$0 sm:$0xff] }
   0x8   :  { %v244_v28 = vpack.c.bf16 %v51_v27, %v50_v26  ;;  %v20_v30 = vld [vmem:[%s396_s0 + $0x18] sm:$0xff]  ;;  %vm22_vm2 = vcmp.ne.f32.partialorder %v18_v29, %v18_v29 }
   0x9   :  { %223 = vmatpush3.bf16.msra.mxu0 %v220_v5  ;;  %257 = vmatpush3.bf16.msra.mxu1 %v220_v5  ;;  %vm24_vm3 = vcmp.ne.f32.partialorder %v20_v30, %v20_v30  ;;  %v33_v31 = vsel %vm22_vm2, %v156_v10, %v18_v29 }
   0xa   :  { %225 = vmatprep.subr.bf16.mxu0 %v224_v8  ;;  %250 = vmatprep.subr.bf16.mxu1 %v224_v8  ;;  %v35_v32 = vsel %vm24_vm3, %v156_v10, %v20_v30 }
   0xd   :  { %227 = vmatpush3.bf16.msra.mxu0 %v224_v8  ;;  %258 = vmatpush3.bf16.msra.mxu1 %v224_v8 }
   0xe   :  { %229 = vmatprep.subr.bf16.mxu0 %v228_v16  ;;  %251 = vmatprep.subr.bf16.mxu1 %v228_v16 }
  0x11   :  { %231 = vmatpush3.bf16.msra.mxu0 %v228_v16  ;;  %259 = vmatpush3.bf16.msra.mxu1 %v228_v16 }
  0x12   :  { %233 = vmatprep.subr.bf16.mxu0 %v232_v19  ;;  %252 = vmatprep.subr.bf16.mxu1 %v232_v19 }
  0x15   :  { %235 = vmatpush3.bf16.msra.mxu0 %v232_v19  ;;  %260 = vmatpush3.bf16.msra.mxu1 %v232_v19 }
  0x16   :  { %237 = vmatprep.subr.bf16.mxu0 %v236_v22  ;;  %253 = vmatprep.subr.bf16.mxu1 %v236_v22 }
  0x19   :  { %239 = vmatpush3.bf16.msra.mxu0 %v236_v22  ;;  %261 = vmatpush3.bf16.msra.mxu1 %v236_v22 }
  0x1a   :  { %241 = vmatprep.subr.bf16.mxu0 %v240_v25  ;;  %254 = vmatprep.subr.bf16.mxu1 %v240_v25 }
  0x1d   :  { %243 = vmatpush3.bf16.msra.mxu0 %v240_v25  ;;  %262 = vmatpush3.bf16.msra.mxu1 %v240_v25 }
  0x1e   :  { %245 = vmatprep.subr.bf16.mxu0 %v244_v28  ;;  %255 = vmatprep.subr.bf16.mxu1 %v244_v28 }
  0x21   :  { %247 = vmatpush3.bf16.msra.mxu0 %v244_v28  ;;  %263 = vmatpush3.bf16.msra.mxu1 %v244_v28 }
  0x24   :  { %211 = vmatmul.mubr.f32.vlgmr.msra.gmra.mrb[0].mxu0 %v33_v31  ;;  %214 = vmatmul.mubr.f32.vlgmr.msra.gmra.mrb[0].mxu1 %v35_v32 }
  0xf7   :  { %v212_v34 = vpop.f32.mrb[0].mxu0  ;;  %v215_v35 = vpop.f32.mrb[0].mxu1 }
  0xf8   :  { %v131_v36 = vadd.f32 %v212_v34, %v157_v33  ;;  %v141_v37 = vadd.f32 %v215_v35, %v157_v33  ;;  %v125_v38 = vpop.f32.mrb[1].mxu0  ;;  %v135_v39 = vpop.f32.mrb[1].mxu1 }
  0xf9   :  { %v126_v40 = vadd.f32 %v157_v33, %v125_v38  ;;  %v136_v41 = vadd.f32 %v157_v33, %v135_v39 }
  0xfa   :  { %v145_v42 = vsel %vm22_vm2, %v131_v36, %v18_v29  ;;  %v147_v43 = vsel %vm24_vm3, %v141_v37, %v20_v30 }
  0xfb   :  { %149 = vst [vmem:[%s399_s4 + $0x8] sm:$0xff] %v145_v42  ;;  %151 = vst [vmem:[%s399_s4 + $0x18] sm:$0xff] %v147_v43  ;;  %v144_v44 = vsel %vm21_vm0, %v126_v40, %v310_v9  ;;  %v146_v45 = vsel %vm23_vm1, %v136_v41, %v326_v13 }
  0xfc   :  { %148 = vst [vmem:[%s399_s4] sm:$0xff] %v144_v44  ;;  %150 = vst [vmem:[%s399_s4 + $0x10] sm:$0xff] %v146_v45 }

</bundles_post_ra>
